<compile_context>
chip_gen: v5e
topology: v5e:2x2
jax: 0.10.0
libtpu: 0.0.40
codegen_flags: <defaults>
</compile_context>

<pallas_src>
import jax
import jax.numpy as jnp
from jax import lax
from jax.experimental import pallas as pl
from jax.experimental.pallas import tpu as pltpu


def _rpn_kernel(xcol_ref, wct_ref, bc_ref, wht_ref, bh_ref, anc_ref, out_ref):
    """Per-(image, R-tile) RPN head + proposal decode, lane-dense in R.

    xcol_ref: (1, 9C, Rt) bf16  im2col patches, transposed (tap*chan major, R minor)
    wct_ref:  (C, 9C)     bf16  3x3 conv weight, reshaped+transposed
    bc_ref:   (C, 1)      f32   conv bias (broadcast over lanes)
    wht_ref:  (8, C)      bf16  fused 1x1 heads [logit | l t r b | obj | pad pad]
    bh_ref:   (8, 1)      f32   fused head bias
    anc_ref:  (4, Rt)     f32   anchors, rows = (x0, y0, x1, y1)
    out_ref:  (1, 8, Rt)  f32   rows 0-3 = decoded box, row 4 = fused score, 5-7 = 0
    """
    x = xcol_ref[0]                                              # (9C, Rt) bf16

    # --- 3x3 conv (as one K=9C matmul) + bias + ReLU, f32 accumulation ---
    hidden = jnp.dot(wct_ref[...], x,
                     preferred_element_type=jnp.float32)         # (C, Rt) f32
    hidden = jnp.maximum(hidden + bc_ref[...], 0.0)

    # --- fused 1x1 heads: logit, 4 deltas, objectness (padded to 8 rows) ---
    head = jnp.dot(wht_ref[...], hidden.astype(jnp.bfloat16),
                   preferred_element_type=jnp.float32) + bh_ref[...]   # (8, Rt)

    logit = head[0:1, :]                                         # (1, Rt)
    d = jnp.maximum(head[1:5, :], 0.0)                           # (4, Rt) relu(l,t,r,b)
    obj = head[5:6, :]                                           # (1, Rt)

    # --- Box2BoxTransformLinear(normalize_by_size=True).apply_deltas ---
    a = anc_ref[...]                                             # (4, Rt)
    ctrs = 0.5 * (a[0:2, :] + a[2:4, :])                         # (2, Rt): cx, cy
    szs = a[2:4, :] - a[0:2, :]                                  # (2, Rt): sw, sh
    scaled = d * jnp.concatenate([szs, szs], axis=0)             # (4, Rt): l*sw, t*sh, r*sw, b*sh
    boxes = jnp.concatenate([ctrs - scaled[0:2, :],
                             ctrs + scaled[2:4, :]], axis=0)     # (4, Rt): x0,y0,x1,y1

    # --- fused objectness score used for proposal ranking ---
    score = jnp.sqrt(jax.nn.sigmoid(logit) * jax.nn.sigmoid(obj))   # (1, Rt)

    pad = jnp.zeros((3,) + score.shape[1:], jnp.float32)
    out_ref[0] = jnp.concatenate([boxes, score, pad], axis=0)    # (8, Rt)


def wsovod_rpn_forward(feat_nchw, params, anchors, *, r_tile=128):
    """Runs the Pallas RPN kernel. Returns (proposal_boxes, objectness_scores).

    feat_nchw: (N, C, H, W) float32
    boxes:     (N, H*W, 4)  decoded proposals
    scores:    (N, H*W)     sqrt(sigmoid(logits) * sigmoid(objectness))
    """
    N, C, H, W = feat_nchw.shape
    R = H * W
    if r_tile % 128 != 0 or R % r_tile != 0:
        r_tile = R                                   # fall back to whole image
    nine_c = 9 * C

    # NCHW -> NHWC, then im2col of the 3x3 taps (conv padding folded in).
    x = jnp.transpose(feat_nchw, (0, 2, 3, 1))
    xp = jnp.pad(x, ((0, 0), (1, 1), (1, 1), (0, 0)))
    taps = [xp[:, dy:dy + H, dx:dx + W, :] for dy in range(3) for dx in range(3)]
    xcol = jnp.concatenate(taps, axis=-1).reshape(N, R, nine_c)
    xcol_t = jnp.transpose(xcol, (0, 2, 1)).astype(jnp.bfloat16)     # (N, 9C, R)

    # Weights: bf16, pre-transposed so the kernel needs no in-kernel transposes.
    wct = jnp.transpose(params["wc"].reshape(nine_c, C)).astype(jnp.bfloat16)  # (C, 9C)
    bc_col = params["bc"].astype(jnp.float32).reshape(C, 1)
    wh8 = jnp.zeros((C, 8), jnp.float32).at[:, :6].set(params["wh"])
    wht = jnp.transpose(wh8).astype(jnp.bfloat16)                              # (8, C)
    bh8 = jnp.zeros((8,), jnp.float32).at[:6].set(params["bh"]).reshape(8, 1)
    anchors_t = jnp.transpose(anchors.astype(jnp.float32))                     # (4, R)

    grid = (N, R // r_tile)
    out = pl.pallas_call(
        _rpn_kernel,
        out_shape=jax.ShapeDtypeStruct((N, 8, R), jnp.float32),
        grid=grid,
        in_specs=[
            pl.BlockSpec((1, nine_c, r_tile), lambda n, r: (n, 0, r)),
            pl.BlockSpec((C, nine_c), lambda n, r: (0, 0)),
            pl.BlockSpec((C, 1), lambda n, r: (0, 0)),
            pl.BlockSpec((8, C), lambda n, r: (0, 0)),
            pl.BlockSpec((8, 1), lambda n, r: (0, 0)),
            pl.BlockSpec((4, r_tile), lambda n, r: (0, r)),
        ],
        out_specs=pl.BlockSpec((1, 8, r_tile), lambda n, r: (n, 0, r)),
        compiler_params=pltpu.CompilerParams(
            dimension_semantics=("parallel", "parallel"),
            vmem_limit_bytes=64 * 1024 * 1024),
    )(xcol_t, wct, bc_col, wht, bh8, anchors_t)

    boxes = jnp.transpose(out[:, :4, :], (0, 2, 1))   # (N, R, 4)
    scores = out[:, 4, :]                             # (N, R)
    return boxes, scores


def make_anchors(H, W, stride):
    """DefaultAnchorGenerator with sizes=[[stride]], aspect_ratios=[1.0],
    offset=0.0 -> one square anchor of side `stride` centered at each cell
    (y-major, x-fastest: matches the NHWC flatten)."""
    ys = jnp.arange(H, dtype=jnp.float32) * stride
    xs = jnp.arange(W, dtype=jnp.float32) * stride
    sy, sx = jnp.meshgrid(ys, xs, indexing="ij")
    sx = sx.reshape(-1)
    sy = sy.reshape(-1)
    half = stride / 2.0
    return jnp.stack([sx - half, sy - half, sx + half, sy + half], axis=1)


def init_params(key, C):
    """Deterministic init mirroring StandardRPNHead (+ extra objectness head):
    conv/head weights ~ N(0, 0.01), biases 0."""
    k1, k2 = jax.random.split(key)
    wc = jax.random.normal(k1, (3, 3, C, C), jnp.float32) * 0.01
    bc = jnp.zeros((C,), jnp.float32)
    wh = jax.random.normal(k2, (C, 6), jnp.float32) * 0.01
    bh = jnp.zeros((6,), jnp.float32)
    return {"wc": wc, "bc": bc, "wh": wh, "bh": bh}


def reference_forward(feat_nchw, params, anchors):
    """Pure-JAX reference at matching precision (bf16 inputs, f32 accum)."""
    N, C, H, W = feat_nchw.shape
    x = jnp.transpose(feat_nchw, (0, 2, 3, 1)).astype(jnp.bfloat16)
    wc = params["wc"].astype(jnp.bfloat16)
    hidden = lax.conv_general_dilated(
        x, wc, window_strides=(1, 1), padding="SAME",
        dimension_numbers=("NHWC", "HWIO", "NHWC"),
        preferred_element_type=jnp.float32) + params["bc"]
    hidden = jnp.maximum(hidden, 0.0)
    head = jnp.dot(hidden.reshape(N * H * W, C).astype(jnp.bfloat16),
                   params["wh"].astype(jnp.bfloat16),
                   preferred_element_type=jnp.float32) + params["bh"]
    head = head.reshape(N, H * W, 6)
    logits = head[..., 0]
    deltas = jnp.maximum(head[..., 1:5], 0.0)
    obj = head[..., 5]
    a = anchors
    ctr_x = 0.5 * (a[:, 0] + a[:, 2])
    ctr_y = 0.5 * (a[:, 1] + a[:, 3])
    sw = a[:, 2] - a[:, 0]
    sh = a[:, 3] - a[:, 1]
    x0 = ctr_x[None] - deltas[..., 0] * sw[None]
    y0 = ctr_y[None] - deltas[..., 1] * sh[None]
    x1 = ctr_x[None] + deltas[..., 2] * sw[None]
    y1 = ctr_y[None] + deltas[..., 3] * sh[None]
    boxes = jnp.stack([x0, y0, x1, y1], axis=-1)
    scores = jnp.sqrt(jax.nn.sigmoid(logits) * jax.nn.sigmoid(obj))
    return boxes, scores


if __name__ == "__main__":
    key = jax.random.PRNGKey(0)
    k_feat, k_param = jax.random.split(key)

    N, C, H, W = 2, 32, 16, 16   # one FPN level, A = 1 anchor per location
    stride = 8

    feat = jax.random.normal(k_feat, (N, C, H, W), jnp.float32)
    params = init_params(k_param, C)
    anchors = make_anchors(H, W, stride)

    boxes, scores = wsovod_rpn_forward(feat, params, anchors)
    jax.block_until_ready((boxes, scores))

    ref_boxes, ref_scores = reference_forward(feat, params, anchors)
    assert boxes.shape == (N, H * W, 4) and scores.shape == (N, H * W)
    assert jnp.allclose(boxes, ref_boxes, atol=5e-3, rtol=5e-3), (
        float(jnp.max(jnp.abs(boxes - ref_boxes))))
    assert jnp.allclose(scores, ref_scores, atol=1e-3, rtol=1e-3), (
        float(jnp.max(jnp.abs(scores - ref_scores))))

    print("KERNEL_OK")
</pallas_src>

<mosaic_0001>
module attributes {stable_mosaic.version = 11 : i64} {
  func.func @_rpn_kernel(%arg0: i32, %arg1: i32, %arg2: memref<1x288x128xbf16, #tpu.memory_space<vmem>>, %arg3: memref<32x288xbf16, #tpu.memory_space<vmem>>, %arg4: memref<32x1xf32, #tpu.memory_space<vmem>>, %arg5: memref<8x32xbf16, #tpu.memory_space<vmem>>, %arg6: memref<8x1xf32, #tpu.memory_space<vmem>>, %arg7: memref<4x128xf32, #tpu.memory_space<vmem>>, %arg8: memref<1x8x128xf32, #tpu.memory_space<vmem>>) attributes {dimension_semantics = [#tpu.dimension_semantics<parallel>, #tpu.dimension_semantics<parallel>], iteration_bounds = array<i64: 2, 2>, scalar_prefetch = 0 : i64, scratch_operands = 0 : i64, tpu.core_type = #tpu.core_type<tc>, window_params = [{transform_indices = @transform_0, window_bounds = array<i64: 1, 288, 128>}, {pipeline_mode = #tpu.pipeline_mode<synchronous>, transform_indices = @transform_1, window_bounds = array<i64: 32, 288>}, {pipeline_mode = #tpu.pipeline_mode<synchronous>, transform_indices = @transform_2, window_bounds = array<i64: 32, 1>}, {pipeline_mode = #tpu.pipeline_mode<synchronous>, transform_indices = @transform_3, window_bounds = array<i64: 8, 32>}, {pipeline_mode = #tpu.pipeline_mode<synchronous>, transform_indices = @transform_4, window_bounds = array<i64: 8, 1>}, {transform_indices = @transform_5, window_bounds = array<i64: 4, 128>}, {transform_indices = @transform_6, window_bounds = array<i64: 1, 8, 128>}]} {
    %c0 = arith.constant 0 : index
    %c0_0 = arith.constant 0 : index
    %c0_1 = arith.constant 0 : index
    %0 = vector.load %arg2[%c0, %c0_0, %c0_1] : memref<1x288x128xbf16, #tpu.memory_space<vmem>>, vector<1x288x128xbf16>
    %1 = vector.shape_cast %0 : vector<1x288x128xbf16> to vector<288x128xbf16>
    %c0_2 = arith.constant 0 : index
    %c0_3 = arith.constant 0 : index
    %2 = vector.load %arg3[%c0_2, %c0_3] : memref<32x288xbf16, #tpu.memory_space<vmem>>, vector<32x288xbf16>
    %cst = arith.constant dense<0.000000e+00> : vector<32x128xf32>
    %3 = tpu.matmul %2, %1, %cst {dimension_numbers = #tpu.dot_dimension_numbers<[1], [0], [0], [1], [0, 0, 1, 1], [], []>} : vector<32x288xbf16>, vector<288x128xbf16>, vector<32x128xf32> -> vector<32x128xf32>
    %c0_4 = arith.constant 0 : index
    %c0_5 = arith.constant 0 : index
    %4 = vector.load %arg4[%c0_4, %c0_5] : memref<32x1xf32, #tpu.memory_space<vmem>>, vector<32x1xf32>
    %5 = vector.broadcast %4 : vector<32x1xf32> to vector<32x128xf32>
    %6 = arith.addf %3, %5 : vector<32x128xf32>
    %cst_6 = arith.constant 0.000000e+00 : f32
    %7 = vector.broadcast %cst_6 : f32 to vector<32x128xf32>
    %8 = arith.maximumf %6, %7 : vector<32x128xf32>
    %c0_7 = arith.constant 0 : index
    %c0_8 = arith.constant 0 : index
    %9 = vector.load %arg5[%c0_7, %c0_8] : memref<8x32xbf16, #tpu.memory_space<vmem>>, vector<8x32xbf16>
    %10 = arith.truncf %8 : vector<32x128xf32> to vector<32x128xbf16>
    %cst_9 = arith.constant dense<0.000000e+00> : vector<8x128xf32>
    %11 = tpu.matmul %9, %10, %cst_9 {dimension_numbers = #tpu.dot_dimension_numbers<[1], [0], [0], [1], [0, 0, 1, 1], [], []>} : vector<8x32xbf16>, vector<32x128xbf16>, vector<8x128xf32> -> vector<8x128xf32>
    %c0_10 = arith.constant 0 : index
    %c0_11 = arith.constant 0 : index
    %12 = vector.load %arg6[%c0_10, %c0_11] : memref<8x1xf32, #tpu.memory_space<vmem>>, vector<8x1xf32>
    %13 = vector.broadcast %12 : vector<8x1xf32> to vector<8x128xf32>
    %14 = arith.addf %11, %13 : vector<8x128xf32>
    %15 = vector.extract_strided_slice %14 {offsets = [0, 0], sizes = [1, 128], strides = [1, 1]} : vector<8x128xf32> to vector<1x128xf32>
    %16 = vector.extract_strided_slice %14 {offsets = [1, 0], sizes = [4, 128], strides = [1, 1]} : vector<8x128xf32> to vector<4x128xf32>
    %cst_12 = arith.constant 0.000000e+00 : f32
    %17 = vector.broadcast %cst_12 : f32 to vector<4x128xf32>
    %18 = arith.maximumf %16, %17 : vector<4x128xf32>
    %19 = vector.extract_strided_slice %14 {offsets = [5, 0], sizes = [1, 128], strides = [1, 1]} : vector<8x128xf32> to vector<1x128xf32>
    %c0_13 = arith.constant 0 : index
    %c0_14 = arith.constant 0 : index
    %20 = vector.load %arg7[%c0_13, %c0_14] : memref<4x128xf32, #tpu.memory_space<vmem>>, vector<4x128xf32>
    %21 = vector.extract_strided_slice %20 {offsets = [0, 0], sizes = [2, 128], strides = [1, 1]} : vector<4x128xf32> to vector<2x128xf32>
    %22 = vector.extract_strided_slice %20 {offsets = [2, 0], sizes = [2, 128], strides = [1, 1]} : vector<4x128xf32> to vector<2x128xf32>
    %23 = arith.addf %21, %22 : vector<2x128xf32>
    %cst_15 = arith.constant 5.000000e-01 : f32
    %24 = vector.broadcast %cst_15 : f32 to vector<2x128xf32>
    %25 = arith.mulf %24, %23 : vector<2x128xf32>
    %26 = vector.extract_strided_slice %20 {offsets = [2, 0], sizes = [2, 128], strides = [1, 1]} : vector<4x128xf32> to vector<2x128xf32>
    %27 = vector.extract_strided_slice %20 {offsets = [0, 0], sizes = [2, 128], strides = [1, 1]} : vector<4x128xf32> to vector<2x128xf32>
    %28 = arith.subf %26, %27 : vector<2x128xf32>
    %29 = tpu.concatenate %28, %28 in 0 : vector<2x128xf32>, vector<2x128xf32> -> vector<4x128xf32>
    %30 = arith.mulf %18, %29 : vector<4x128xf32>
    %31 = vector.extract_strided_slice %30 {offsets = [0, 0], sizes = [2, 128], strides = [1, 1]} : vector<4x128xf32> to vector<2x128xf32>
    %32 = arith.subf %25, %31 : vector<2x128xf32>
    %33 = vector.extract_strided_slice %30 {offsets = [2, 0], sizes = [2, 128], strides = [1, 1]} : vector<4x128xf32> to vector<2x128xf32>
    %34 = arith.addf %25, %33 : vector<2x128xf32>
    %35 = tpu.concatenate %32, %34 in 0 : vector<2x128xf32>, vector<2x128xf32> -> vector<4x128xf32>
    %36 = arith.negf %15 : vector<1x128xf32>
    %37 = math.exp %36 : vector<1x128xf32>
    %cst_16 = arith.constant 1.000000e+00 : f32
    %38 = vector.broadcast %cst_16 : f32 to vector<1x128xf32>
    %39 = arith.addf %38, %37 : vector<1x128xf32>
    %40 = arith.divf %38, %39 : vector<1x128xf32>
    %41 = arith.negf %19 : vector<1x128xf32>
    %42 = math.exp %41 : vector<1x128xf32>
    %cst_17 = arith.constant 1.000000e+00 : f32
    %43 = vector.broadcast %cst_17 : f32 to vector<1x128xf32>
    %44 = arith.addf %43, %42 : vector<1x128xf32>
    %45 = arith.divf %43, %44 : vector<1x128xf32>
    %46 = arith.mulf %40, %45 : vector<1x128xf32>
    %47 = math.sqrt %46 : vector<1x128xf32>
    %cst_18 = arith.constant 0.000000e+00 : f32
    %48 = vector.broadcast %cst_18 : f32 to vector<3x128xf32>
    %49 = tpu.concatenate %35, %47, %48 in 0 : vector<4x128xf32>, vector<1x128xf32>, vector<3x128xf32> -> vector<8x128xf32>
    %c0_19 = arith.constant 0 : index
    %c0_20 = arith.constant 0 : index
    %c0_21 = arith.constant 0 : index
    %50 = vector.load %arg8[%c0_19, %c0_20, %c0_21] : memref<1x8x128xf32, #tpu.memory_space<vmem>>, vector<1x8x128xf32>
    %51 = vector.shape_cast %50 : vector<1x8x128xf32> to vector<8x128xf32>
    %52 = vector.shape_cast %49 : vector<8x128xf32> to vector<1x8x128xf32>
    tpu.vector_store %arg8[%c0_19, %c0_20, %c0_21], %52 {strides = array<i32>} : memref<1x8x128xf32, #tpu.memory_space<vmem>>, vector<1x8x128xf32>,
    return
  }
  func.func @transform_0(%arg0: i32, %arg1: i32) -> (i32, i32, i32) {
    %c0_i32 = arith.constant 0 : i32
    %c0_i32_0 = arith.constant 0 : i32
    return %arg0, %c0_i32, %arg1 : i32, i32, i32
  }
  func.func @transform_1(%arg0: i32, %arg1: i32) -> (i32, i32) {
    %c0_i32 = arith.constant 0 : i32
    %c0_i32_0 = arith.constant 0 : i32
    %c0_i32_1 = arith.constant 0 : i32
    return %c0_i32, %c0_i32_0 : i32, i32
  }
  func.func @transform_2(%arg0: i32, %arg1: i32) -> (i32, i32) {
    %c0_i32 = arith.constant 0 : i32
    %c0_i32_0 = arith.constant 0 : i32
    %c0_i32_1 = arith.constant 0 : i32
    return %c0_i32, %c0_i32_0 : i32, i32
  }
  func.func @transform_3(%arg0: i32, %arg1: i32) -> (i32, i32) {
    %c0_i32 = arith.constant 0 : i32
    %c0_i32_0 = arith.constant 0 : i32
    %c0_i32_1 = arith.constant 0 : i32
    return %c0_i32, %c0_i32_0 : i32, i32
  }
  func.func @transform_4(%arg0: i32, %arg1: i32) -> (i32, i32) {
    %c0_i32 = arith.constant 0 : i32
    %c0_i32_0 = arith.constant 0 : i32
    %c0_i32_1 = arith.constant 0 : i32
    return %c0_i32, %c0_i32_0 : i32, i32
  }
  func.func @transform_5(%arg0: i32, %arg1: i32) -> (i32, i32) {
    %c0_i32 = arith.constant 0 : i32
    %c0_i32_0 = arith.constant 0 : i32
    return %c0_i32, %arg1 : i32, i32
  }
  func.func @transform_6(%arg0: i32, %arg1: i32) -> (i32, i32, i32) {
    %c0_i32 = arith.constant 0 : i32
    %c0_i32_0 = arith.constant 0 : i32
    return %arg0, %c0_i32, %arg1 : i32, i32, i32
  }
}

</mosaic_0001>

<bundles_post_ra>
// kernel: tpu_custom_call.1
= control target key start
LH: loop header
LB: loop body
LE: loop exit
PB: predicated region body
PF: predicated region fallthrough
CT: control target
= control target key end

     0   :  { %s1495_s0 = inlined_call_operand.hbm [shape: bf16[2,288,256], index: 0, kind: input, shape index: {}]   ;;  %s1496_s1 = inlined_call_operand.hbm [shape: bf16[32,288], index: 1, kind: input, shape index: {}]   ;;  %s1497_s2 = inlined_call_operand.vmem [shape: f32[32,1], index: 2, kind: input, shape index: {}]   ;;  %s1498_s3 = inlined_call_operand.vmem [shape: bf16[8,32], index: 3, kind: input, shape index: {}]   ;;  %s1499_s4 = inlined_call_operand.vmem [shape: f32[8,1], index: 4, kind: input, shape index: {}]   ;;  %s1500_s5 = inlined_call_operand.vmem [shape: f32[4,256], index: 5, kind: input, shape index: {}]   ;;  %s1501_s6 = inlined_call_operand.hbm [shape: f32[2,8,256], index: 6, kind: output, shape index: {}]  }
   0x1   :  { %1509 = sst [smem:[#allocation17_spill]] %s1496_s1 }
   0x2   :  { %1510 = sst [smem:[#allocation18_spill]] %s1500_s5 }
   0x3   :  { %1511 = sst [smem:[#allocation19_spill]] %s1501_s6 }
   0x4   :  { %11 = vsyncpa [#allocation3], 0 }
   0x5   :  { %13 = vsyncpa [#allocation3 + $0x1], 0 }
   0x6   :  { %14 = vsyncpa [#allocation6], 0 }
   0x7   :  { %15 = vsyncpa [#allocation4], 0 }
   0x8   :  { %17 = vsyncpa [#allocation4 + $0x1], 0  ;;  %s1273_s21 = smov 0   ;;  %s1275_s22 = smov 0  }
   0x9   :  { %s1277_s23 = smov 0   ;;  %s1279_s24 = smov 0  }
   0xa   :  { %s1281_s25 = smov 0   ;;  %s1283_s26 = smov 0  }
   0xb   :  { %s1285_s27 = smov 0   ;;  %s1287_s28 = smov 0  }
   0xc LB: > { %1512 = sst [smem:[#allocation11_spill]] %s1201_s21  ;;  %s821_s29 = sadd.s32 4294967295, %s1229_s28   ;;  %s1229_s28 = sphi %s1287_s28, %s23_s28   ;;  %s1225_s27 = sphi %s1285_s27, %s1540_s27   ;;  %s1221_s26 = sphi %s1283_s26, %s1539_s26   ;;  %s1217_s25 = sphi %s1281_s25, %s1538_s25   ;;  %s1213_s24 = sphi %s1279_s24, %s1537_s24   ;;  %s1209_s23 = sphi %s1277_s23, %s1536_s23   ;;  %s1205_s22 = sphi %s1275_s22, %s1535_s22   ;;  %s1201_s21 = sphi %s1273_s21, %s1534_s21  }
   0xd   : > { %1513 = sst [smem:[#allocation12_spill]] %s1217_s25  ;;  %s822_s30 = sadd.s32 4294967294, %s1229_s28  }
   0xe   : > { %p57_p0 = scmp.ne.s32.totalorder %s1205_s22, %s1201_s21  ;;  %p1317_p1 = scmp.eq.s32.totalorder %s821_s29, 0 }
   0xf   : > { %p1321_p2 = scmp.eq.s32.totalorder %s821_s29, 3  ;;  %p199_p3 = scmp.eq.s32.totalorder %s822_s30, 3 }
  0x10   : > { %p1327_p4 = por %p1317_p1, %p57_p0  ;;  %p823_p5 = scmp.ge.s32.totalorder %s1229_s28, 1 }
  0x11   : > { %p1332_p6 = por %p199_p3, %p57_p0  ;;  %p206_p7 = scmp.lt.s32.totalorder %s1229_s28, 5 }
  0x12   : > { %s1519_s1 = sld [smem:[#allocation17_spill]]  ;;  %s1231_s15 = smov [#allocation5]  }
  0x13   : > { %s1517_s10 = scalar_select %p1332_p6, 1, 0 }
  0x14   : > { %p1340_p8 = pnand %p823_p5, %p206_p7  ;;  %s219_s16 = sshll.u32 %s1231_s15, 4  ;;  %s220_s16 = int_to_ptr.vmem [resolvable:$true] %s219_s16 }
  0x15   : > { %1518 = sst [smem:[#allocation13_spill]] %s1517_s10  ;;  %s1232_s17 = smov 192  }
  0x16   : > { %p971_p9 = pneg %p1340_p8  ;;  %s1233_s18 = smov 12  }
  0x17   : > { %s32_s19 = sadd.s32 1, %s1221_s26  ;;  %s35_s20 = sadd.s32 1, %s1225_s27 }
  0x18   : > { %s217_s13 = sshll.u32 %s1519_s1, 4  ;;  %p972_p10 = pnand %p971_p9, %p1317_p1  ;;  %s218_s13 = int_to_ptr.hbm [resolvable:$true] %s217_s13 }
  0x19   : > { %p33_p11 = scmp.ge.s32.totalorder %s32_s19, 2  ;;  %s44_s29 = sadd.s32 1, %s1209_s23 }
  0x1a   : > { %974 = dma.hbm_to_vmem [thread:$0]  (!%p972_p10), %s218_s13, 768, %s220_s16, [#allocation6], %s1232_s17, %s1232_s17, %s1233_s18  }
  0x1b   : > { %p51_p12 = scmp.ne.s32.totalorder %s1209_s23, %s1205_s22  ;;  %s1542_s19 = smov (%p33_p11, %s32_s19), 0 }
  0x1c   : > { %1521 = sst [smem:[#allocation14_spill]] %s1542_s19  ;;  %s1544_s20 = smov (!%p33_p11, %s35_s20), %s1225_s27 }
  0x1d   : > { %s40_s30 = ssub.s32 %s1221_s26, %s1542_s19  ;;  %p52_p13 = scmp.eq.s32.totalorder %s1229_s28, 0 }
  0x1e   : > { %p37_p0 = scmp.ge.s32.totalorder %s1544_s20, 2  ;;  %p1361_p3 = por %p1321_p2, %p51_p12 }
  0x1f   : > { %p1365_p5 = por %p52_p13, %p51_p12  ;;  %p984_p7 = scmp.lt.s32.totalorder %s1229_s28, 4 }
  0x20   : > { %s1522_s11 = scalar_select %p1361_p3, 1, 0 }
  0x21   : > { %s1546_s20 = smov (%p37_p0, %s1544_s20), 0  ;;  %s242_s13 = sand.u32 1, %s1209_s23  }
  0x22   : > { %1523 = sst [smem:[#allocation15_spill]] %s1522_s11  ;;  %s961_s15 = smul.u32 72, %s1225_s27 }
  0x23   : > { %1525 = sst [smem:[#allocation16_spill]] %s1546_s20  ;;  %s39_s16 = ssub.s32 %s1225_s27, %s1546_s20 }
  0x24   : > { %s41_s17 = sor.u32 %s40_s30, %s39_s16  ;;  %s960_s18 = smul.u32 144, %s242_s13 }
  0x25   : > { %p42_p9 = scmp.eq.s32.totalorder %s41_s17, 0  ;;  %s250_s8 = sadd.s32 %s1221_s26, %s961_s15 }
  0x26   : > { %s826_s1 = sshll.u32 %s250_s8, 2  ;;  %s246_s6 = scalar_lea.vmem [#allocation2], %s960_s18 }
  0x27   : > { %s1378_s19 = scalar_select %p42_p9, %s1209_s23, %s44_s29  }
  0x28   : > { %s252_s11 = scalar_lea.hbm %s1495_s0, %s826_s1  ;;  %s255_s25 = sshll.u32 %s246_s6, 4  ;;  %s256_s25 = int_to_ptr.vmem [resolvable:$true] %s255_s25 }
  0x29   : > { %s253_s5 = sshll.u32 %s252_s11, 4  ;;  %p976_p2 = pnand %p984_p7, %p1365_p5  ;;  %s254_s5 = int_to_ptr.hbm [resolvable:$true] %s253_s5 }
  0x2a   : > { %s243_s20 = scalar_lea.sflag [#allocation3], %s242_s13  ;;  %s1234_s30 = smov 128  }
  0x2b   : > { %s1235_s16 = smov 64   ;;  %s1236_s17 = smov 4  }
  0x2c   : > { %978 = dma.hbm_to_vmem [thread:$0]  (!%p976_p2), %s254_s5, 2304, %s256_s25, %s243_s20, %s1234_s30, %s1235_s16, %s1236_s17  }
  0x2d   : > { %274 = sbr.rel (%p1340_p8) target bundleno = 446 (0x1be), region = 44  ;;  %s1390_s21 = sand.u32 (!%p1340_p8), 1, %s1205_s22  }
  0x2e   : > { %s962_s1 = smul.u32 (!%p1340_p8), 144, %s1390_s21  ;;  %s277_s6 = scalar_lea.sflag (!%p1340_p8), [#allocation3], %s1390_s21 }
  0x30   : > { %s1394_s10 = scalar_lea.vmem (!%p1340_p8), [#allocation2], %s962_s1 }
  0x32   : > { %1188 = dma.done.wait (%p1327_p4), %s277_s6, 2304  }
  0x33   : > { %1190 = vsyncadd (%p1327_p4), %s277_s6, 4294964992 }
  0x34   : > { %1192 = dma.done.wait (%p1317_p1), [#allocation6], 768  }
  0x35   : > { %1194 = vsyncadd (%p1317_p1), [#allocation6], 4294966528  ;;  %v943_v0 = vld [vmem:[%s1394_s10 + $0x38] sm:$0xff]  ;;  %v942_v2 = vld [vmem:[%s1394_s10 + $0x30] sm:$0xff]  ;;  %v1237_v5 = vmov 0   ;;  %vm530_vm0 = vcmask 261120  }
  0x36   : > { %v951_v1 = vld [vmem:[%s1394_s10 + $0x78] sm:$0xff]  ;;  %537 = vmatpush.bf16.msra.mxu0 %v943_v0  ;;  %v950_v3 = vld [vmem:[%s1394_s10 + $0x70] sm:$0xff]  ;;  %v953_v4 = vld [vmem:[%s1394_s10 + $0x88] sm:$0xff]  ;;  %1059 = vset.pattern.permute.xlu1 %v1237_v5  ;;  %p319_p1 = scmp.lt.s32.totalorder %s1213_s24, 1  ;;  %s1526_s1 = sld [smem:[#allocation18_spill]]  ;;  %vm636_vm5 = vcmask 1041408  }
  0x37   : > { %556 = vmatpush.bf16.msra.mxu1 %v951_v1  ;;  %1058 = vset.pattern.permute.xlu0 %v1237_v5  ;;  %v952_v6 = vld [vmem:[%s1394_s10 + $0x80] sm:$0xff]  ;;  %v841_v7 = vld [vmem:[#allocation5 + $0x8] sm:$0xf]  ;;  %v938_v19 = vld [vmem:[%s1394_s10 + $0x10] sm:$0xff]  ;;  %s829_s7 = sshll.u32 %s1390_s21, 3  ;;  %s1528_s29 = sld [smem:[#allocation19_spill]] }
  0x38   : > { %581 = vmatpush.bf16.msra.mxu2 %v953_v4  ;;  %1060 = vset.pattern.permute.xlu2 %v1237_v5  ;;  %v956_v8 = vld [vmem:[#allocation5 + $0x10] sm:$0xf0]  ;;  %v941_v9 = vld [vmem:[%s1394_s10 + $0x28] sm:$0xff]  ;;  %v368_v12 = vld [vmem:[%s1497_s2] sm:$0xff]  ;;  %s320_s8 = scalar_select %p319_p1, %s1213_s24, 1  ;;  %vm691_vm8 = vcmask 1043456  }
  0x39   : > { %v949_v10 = vld [vmem:[%s1394_s10 + $0x68] sm:$0xff]  ;;  %v842_v11 = vor.u32 %v956_v8, %v841_v7  ;;  %374 = vperm.xlu1 %1059, %v368_v12   ;;  %v940_v13 = vld [vmem:[%s1394_s10 + $0x20] sm:$0xff]  ;;  %v939_v15 = vld [vmem:[%s1394_s10 + $0x18] sm:$0xff]  ;;  %vm693_vm9 = vcmask 1044480   ;;  %s697_s18 = scalar_lea.sflag [#allocation4], %s1390_s21 }
  0x3a   : > { %538 = vmatpush.bf16.msra.mxu0 %v942_v2  ;;  %v948_v14 = vld [vmem:[%s1394_s10 + $0x60] sm:$0xff]  ;;  %v947_v16 = vld [vmem:[%s1394_s10 + $0x58] sm:$0xff]  ;;  %v946_v20 = vld [vmem:[%s1394_s10 + $0x50] sm:$0xff]  ;;  %s830_s30 = sshll.u32 %s320_s8, 2 }
  0x3b   : > { %557 = vmatpush.bf16.msra.mxu1 %v950_v3  ;;  %v370_v17 = vld [vmem:[%s1497_s2 + $0x10] sm:$0xff]  ;;  %v369_v18 = vld [vmem:[%s1497_s2 + $0x8] sm:$0xff]  ;;  %v853_v21 = vld [vmem:[#allocation5 + $0x20] sm:$0xf] }
  0x3c   : > { %582 = vmatpush.bf16.msra.mxu2 %v952_v6  ;;  %384 = vperm.xlu0 %1058, %v370_v17   ;;  %v959_v22 = vld [vmem:[#allocation5 + $0x28] sm:$0xf0]  ;;  %v371_v26 = vld [vmem:[%s1497_s2 + $0x18] sm:$0xff]  ;;  %v936_v27 = vld [vmem:[%s1394_s10] sm:$0xff]  ;;  %s322_s6 = scalar_lea.vmem %s1526_s1, %s830_s30 }
  0x3d   : > { %v937_v23 = vld [vmem:[%s1394_s10 + $0x8] sm:$0xff]  ;;  %v854_v25 = vor.u32 %v959_v22, %v853_v21  ;;  %v944_v28 = vld [vmem:[%s1394_s10 + $0x40] sm:$0xff]  ;;  %s1147_s1 = scalar_lea.hbm %s1528_s29, 32 }
  0x3e   : > { %539 = vmatpush.bf16.msra.mxu0 %v941_v9  ;;  %v945_v24 = vld [vmem:[%s1394_s10 + $0x48] sm:$0xff]  ;;  %v833_v29 = vld [vmem:[#allocation5] sm:$0xf]  ;;  %v954_v31 = vld [vmem:[#allocation5 + $0x4] sm:$0xf]  ;;  %s1527_s10 = sld [smem:[#allocation12_spill]] }
  0x3f   : > { %558 = vmatpush.bf16.msra.mxu1 %v949_v10  ;;  %927 = vmatmul.msk.bf16.vlgmr.msra.gmra.mxu2 %vm530_vm0, %v842_v11  ;;  %v955_v30 = vld [vmem:[#allocation5 + $0x8] sm:$0xf0]  ;;  %v835_v32 = vld [vmem:[#allocation5 + $0xc] sm:$0xf0]  ;;  %v845_v35 = vld [vmem:[#allocation5 + $0x18] sm:$0xf] }
  0x40   : > { %v834_v33 = vor.u32 %v955_v30, %v833_v29  ;;  %v838_v34 = vor.u32 %v954_v31, %v835_v32  ;;  %v958_v36 = vld [vmem:[#allocation5 + $0x20] sm:$0xf0]  ;;  %v957_v37 = vld [vmem:[#allocation5 + $0x1c] sm:$0xf]  ;;  %v847_v38 = vld [vmem:[#allocation5 + $0x24] sm:$0xf0] }
  0x41   : > { %379 = vperm.xlu1 %1059, %v369_v18   ;;  %v846_v39 = vor.u32 %v958_v36, %v845_v35  ;;  %v850_v40 = vor.u32 %v957_v37, %v847_v38  ;;  %v601_v48 = vld [vmem:[%s1499_s4] sm:$0xff] }
  0x42   : > { %540 = vmatpush.bf16.msra.mxu0 %v940_v13  ;;  %604 = vperm.xlu2 %1060, %v601_v48   ;;  %v598_v12 = vld [vmem:[%s1498_s3] sm:$0xf] }
  0x43   : > { %559 = vmatpush.bf16.msra.mxu1 %v948_v14 }
  0x44   : > { %389 = vperm.xlu0 %1058, %v371_v26   ;;  %s932_s5 = sshll.u32 %s1527_s10, 1 }
  0x45   : > { %s707_s25 = sadd.s32 %s1213_s24, %s932_s5  ;;  %s318_s24 = scalar_lea.vmem [#allocation7], %s829_s7 }
  0x46   : > { %541 = vmatpush.bf16.msra.mxu0 %v939_v15  ;;  %s933_s9 = sshll.u32 %s707_s25, 3  ;;  %s711_s13 = sshll.u32 %s318_s24, 4  ;;  %s712_s13 = int_to_ptr.vmem [resolvable:$true] %s711_s13 }
  0x47   : > { %560 = vmatpush.bf16.msra.mxu1 %v947_v16  ;;  %s709_s11 = scalar_lea.hbm %s1528_s29, %s933_s9 }
  0x48   : > { %s713_s15 = sshll.u32 %s709_s11, 4  ;;  %s714_s15 = int_to_ptr.hbm [resolvable:$true] %s713_s15 }
  0x49   : > { %s1141_s8 = sshra.s32 %s714_s15, 4  ;;  %s1142_s8 = int_to_ptr.hbm [resolvable:$true] %s1141_s8 }
  0x4a   : > { %542 = vmatpush.bf16.msra.mxu0 %v938_v19  ;;  %s1143_s30 = scalar_lea.hbm %s1142_s8, 8  ;;  %p1148_p11 = scmp.lt.s32.totalorder %s1142_s8, %s1528_s29 }
  0x4b   : > { %561 = vmatpush.bf16.msra.mxu1 %v946_v20  ;;  %v624_v20 = vld [vmem:[%s322_s6] sm:$0xf]  ;;  %p1144_p4 = scmp.ne.s32.totalorder %s1142_s8, %s1143_s30  ;;  %p1149_p12 = scmp.lt.s32.totalorder %s1147_s1, %s1143_s30 }
  0x4c   : > { %v626_v38 = vrot.slane %v624_v20, 2 }
  0x4d   : > { %p1145_p8 = pnand %p1144_p4, %p1361_p3  ;;  %p1150_p13 = por %p1149_p12, %p1148_p11 }
  0x4e   : > { %543 = vmatpush.bf16.msra.mxu0 %v937_v23  ;;  %v630_v23 = vrot.slane %v624_v20, 6 }
  0x4f   : > { %562 = vmatpush.bf16.msra.mxu1 %v945_v24  ;;  %928 = vmatmul.msk.bf16.gmra.mxu2 %vm530_vm0, %v854_v25  ;;  %p1146_p10 = pneg %p1145_p8 }
  0x51   : > { %p1151_p0 = pnand %p1150_p13, %p1146_p10 }
  0x52   : > { %544 = vmatpush.bf16.msra.mxu0 %v936_v27 }
  0x53   : > { %563 = vmatpush.bf16.msra.mxu1 %v944_v28  ;;  %v632_v28 = vsub.f32 %v624_v20, %v630_v23 }
  0x55   : > { %545 = vmatmul.bf16.vlgmr.msra.gmra.mxu0 %v834_v33  ;;  %v634_v32 = vrot.slane %v632_v28, 2 }
  0x56   : > { %564 = vmatmul.bf16.vlgmr.msra.gmra.mxu1 %v838_v34 }
  0x57   : > { %v637_v36 = vsel %vm636_vm5, %v634_v32, %v632_v28 }
  0x65   : > { %550 = vmatmul.bf16.gmra.mxu0 %v846_v39  ;;  %v639_v39 = vrot.slane %v637_v36, 7 }
  0x66   : > { %569 = vmatmul.bf16.gmra.mxu1 %v850_v40 }
  0x9c   : > { %v605_v13 = vpop.permute.xlu2 %604 }
  0xab   : > { %v375_v44 = vpop.permute.xlu1 %374 }
  0xae   : > { %v385_v49 = vpop.permute.xlu0 %384 }
  0xb3   : > { %v380_v52 = vpop.permute.xlu1 %379 }
  0xb6   : > { %v390_v58 = vpop.permute.xlu0 %389 }
  0xc2   : > { %v584_v41 = vpop.f32.mrf.mxu2 }
  0xca   : > { %v586_v45 = vpop.f32.mrf.mxu2 }
  0xd2   : > { %v546_v42 = vpop.f32.mrf.mxu0  ;;  %v589_v53 = vpop.f32.mrf.mxu2 }
  0xd3   : > { %v565_v43 = vpop.f32.mrf.mxu1  ;;  %v547_v56 = vadd.f32 %v546_v42, %v375_v44 }
  0xd5   : > { %v566_v63 = vadd.f32 %v565_v43, %v547_v56 }
  0xd7   : > { %v585_v5 = vadd.f32 %v584_v41, %v566_v63  ;;  %v628_v41 = vadd.f32 %v626_v38, %v624_v20 }
  0xd9   : > { %v594_v10 = vmax.f32 %v585_v5, 0.0 }
  0xda   : > { %v548_v46 = vpop.f32.mrf.mxu0  ;;  %v591_v2 = vpop.f32.mrf.mxu2 }
  0xdb   : > { %v567_v47 = vpop.f32.mrf.mxu1  ;;  %v549_v55 = vadd.f32 %v548_v46, %v380_v52 }
  0xdd   : > { %v568_v60 = vadd.f32 %v567_v47, %v549_v55 }
  0xdf   : > { %v587_v3 = vadd.f32 %v586_v45, %v568_v60  ;;  %v629_v45 = vmul.f32 0.5, %v628_v41 }
  0xe1   : > { %v595_v8 = vmax.f32 %v587_v3, 0.0 }
  0xe2   : > { %v551_v50 = vpop.f32.mrf.mxu0 }
  0xe3   : > { %v570_v51 = vpop.f32.mrf.mxu1  ;;  %v552_v54 = vadd.f32 %v551_v50, %v385_v49  ;;  %v599_v11 = vpack.c.bf16 %v595_v8, %v594_v10 }
  0xe5   : > { %v571_v57 = vadd.f32 %v570_v51, %v552_v54 }
  0xe7   : > { %v590_v1 = vadd.f32 %v589_v53, %v571_v57 }
  0xe9   : > { %v596_v6 = vmax.f32 %v590_v1, 0.0 }
  0xea   : > { %v553_v59 = vpop.f32.mrf.mxu0 }
  0xeb   : > { %v554_v61 = vadd.f32 %v553_v59, %v390_v58  ;;  %v572_v62 = vpop.f32.mrf.mxu1 }
  0xed   : > { %v573_v0 = vadd.f32 %v572_v62, %v554_v61 }
  0xef   : > { %v592_v4 = vadd.f32 %v591_v2, %v573_v0 }
  0xf1   : > { %v597_v7 = vmax.f32 %v592_v4, 0.0 }
  0xf3   : > { %v600_v9 = vpack.c.bf16 %v597_v7, %v596_v6 }
  0xf5   : > { %616 = vmatpush.bf16.msra.mxu3 %v600_v9 }
  0xf9   : > { %617 = vmatpush.bf16.msra.mxu3 %v599_v11 }
  0xfc   : > { %929 = vmatmul.msk.bf16.vlgmr.msra.gmra.mxu3 %vm530_vm0, %v598_v12 }
 0x17f   : > { %v619_v14 = vpop.f32.mrf.mxu3 }
 0x180   : > { %v620_v15 = vadd.f32 %v619_v14, %v605_v13 }
 0x182   : > { %v930_v16 = vmul.f32 -1.442695, %v620_v15  ;;  %v623_v37 = vmax.f32 %v620_v15, 0.0 }
 0x184   : > { %1061 = vpow2.f32 %v930_v16  ;;  %v641_v42 = vmul.f32 %v639_v39, %v623_v37 }
 0x186   : > { %v646_v46 = vrot.slane %v641_v42, 3  ;;  %v643_v51 = vrot.slane %v641_v42, 1 }
 0x187   : > { %v621_v17 = vpop.f32.mrf.mxu3 }
 0x188   : > { %v648_v49 = vadd.f32 %v646_v46, %v629_v45  ;;  %v645_v56 = vsub.f32 %v629_v45, %v643_v51 }
 0x18a   : > { %v1062_v18 = vpop.eup %1061  ;;  %v650_v53 = vrot.slane %v648_v49, 6 }
 0x18b   : > { %v656_v19 = vadd.f32 1.0, %v1062_v18 }
 0x18c   : > { %v652_v59 = vsel %vm636_vm5, %v645_v56, %v650_v53 }
 0x18d   : > { %1063 = vrcp.f32 %v656_v19  ;;  %v668_v25 = vand.u32 2147483648, %v656_v19  ;;  %v666_v27 = vand.u32 2147483647, %v656_v19  ;;  %vm662_vm2 = vweird.f32 %v656_v19 }
 0x18f   : > { %v669_v30 = vor.u32 1.1754944e-38, %v668_v25  ;;  %vm667_vm4 = vcmp.eq.f32.partialorder %v666_v27, 8.507059e+37 }
 0x193   : > { %v1064_v21 = vpop.eup %1063 }
 0x194   : > { %v658_v22 = vmul.f32 %v1064_v21, %v656_v19  ;;  %vm663_vm1 = vweird.f32 %v1064_v21 }
 0x195   : > { %vm664_vm3 = vmor %vm662_vm2, %vm663_vm1 }
 0x196   : > { %v659_v24 = vsub.f32 1.0, %v658_v22 }
 0x198   : > { %v660_v26 = vmul.f32 %v1064_v21, %v659_v24 }
 0x19a   : > { %v661_v29 = vadd.f32 %v1064_v21, %v660_v26 }
 0x19c   : > { %v665_v31 = vsel %vm664_vm3, %v1064_v21, %v661_v29 }
 0x19d   : > { %v670_v33 = vsel %vm667_vm4, %v669_v30, %v665_v31 }
 0x19e   : > { %v673_v34 = vrot.slane %v670_v33, 5 }
 0x1a0   : > { %v675_v35 = vmul.f32 %v673_v34, %v670_v33 }
 0x1a2   : > { %1065 = vrsqrt.f32 %v675_v35  ;;  %vm683_vm6 = vcmp.eq.f32.partialorder %v675_v35, inf  ;;  %v686_v54 = vand.u32 2147483648, %v675_v35  ;;  %vm685_vm7 = vcmp.eq.f32.partialorder %v675_v35, 0.0 }
 0x1a8   : > { %v1066_v40 = vpop.eup %1065 }
 0x1a9   : > { %v677_v43 = vmul.f32 %v1066_v40, %v675_v35 }
 0x1ab   : > { %v678_v44 = vmul.f32 %v1066_v40, %v677_v43 }
 0x1ad   : > { %v679_v47 = vmul.f32 0.5, %v678_v44 }
 0x1af   : > { %v680_v48 = vsub.f32 1.5, %v679_v47 }
 0x1b1   : > { %v681_v50 = vmul.f32 %v1066_v40, %v680_v48 }
 0x1b3   : > { %v682_v52 = vmul.f32 %v681_v50, %v675_v35 }
 0x1b5   : > { %v684_v55 = vsel %vm683_vm6, %v675_v35, %v682_v52 }
 0x1b6   : > { %v687_v57 = vsel %vm685_vm7, %v686_v54, %v684_v55 }
 0x1b7   : > { %v689_v58 = vrot.slane %v687_v57, 4 }
 0x1b9   : > { %v692_v60 = vsel %vm691_vm8, %v652_v59, %v689_v58 }
 0x1ba   : > { %v694_v61 = vsel %vm693_vm9, %v692_v60, 0.0 }
 0x1bb   : > { %695 = vst [vmem:[%s318_s24] sm:$0xff] %v694_v61 }
 0x1bc   : > { %1154 = shalt.err (!%p1151_p0)
}
 0x1bd   : > { %969 = dma.vmem_to_hbm [thread:$0]  (%p1361_p3), %s712_s13, 128, %s714_s15, %s697_s18  }
 0x1be PF: > { %s1530_s21 = sld [smem:[#allocation11_spill]]  ;;  %p986_p5 = scmp.ge.s32.totalorder %s1229_s28, 2 }
 0x1c0   : > { %p980_p7 = pnand %p986_p5, %p1332_p6 }
 0x1c2   : > { %p981_p9 = pneg %p980_p7 }
 0x1c4   : > { %s725_s25 = sand.u32 1, %s1530_s21  }
 0x1c5   : > { %s726_s7 = scalar_lea.sflag [#allocation4], %s725_s25 }
 0x1c6   : > { %1196 = dma.done.wait (%p981_p9), %s726_s7, 128  }
 0x1c7   : > { %1198 = vsyncadd (%p981_p9), %s726_s7, 4294967168  ;;  %s23_s28 = sadd.s32 1, %s1229_s28   ;;  %s1532_s9 = sld [smem:[#allocation14_spill]] }
 0x1c8   : > { %p20_p2 = scmp.ge.s32.totalorder %s23_s28, 6   ;;  %s1533_s14 = sld [smem:[#allocation16_spill]] }
 0x1c9   : > { %s1534_s21 = smov %s1205_s22  ;;  %s1535_s22 = smov %s1209_s23 }
 0x1ca   : > { %s1536_s23 = smov %s1378_s19  ;;  %s1537_s24 = smov %s1221_s26 }
 0x1cb   : > { %s1538_s25 = smov %s1225_s27  ;;  %22 = sbr.rel (!%p20_p2) target bundleno = 12 (0xc), region = 96 }
 0x1cd   : > { %s1539_s26 = smov %s1532_s9 }
 0x1ce   : > { %s1540_s27 = smov %s1533_s14 }
 0x1d0   :  { %732 = vsyncpa [#allocation3], 1 }
 0x1d1   :  { %734 = vsyncpa [#allocation3 + $0x1], 1 }
 0x1d2   :  { %735 = vsyncpa [#allocation6], 1 }
 0x1d3   :  { %736 = vsyncpa [#allocation4], 1 }
 0x1d4   :  { %738 = vsyncpa [#allocation4 + $0x1], 1 }

</bundles_post_ra>
